<compile_context>
chip_gen: v7x
topology: tpu7x:2x2x1
jax: 0.10.0
libtpu: 0.0.40
codegen_flags: <defaults>
</compile_context>

<pallas_src>
import functools
from types import SimpleNamespace

import jax
import jax.numpy as jnp
from jax.experimental import pallas as pl
from jax.experimental.pallas import tpu as pltpu

SH_C0 = 0.28209479177387814


def _round_up(x, m):
    return (x + m - 1) // m * m


# ----------------------------- Pallas kernels -------------------------------

def voxelize_kernel(idx_ref, feat_ref, out_ref, acc_ref, *, tv):
    # layout: idx (1, tn) int32 flat voxel index per point (padded points = -1),
    #         feat (tn, C) f32 per-point accumulands [x, y, z, 1, pad...],
    #         out  (tv, C) f32 scatter-add expressed as one-hot matmul (MXU),
    #         acc  (tv, C) f32 VMEM accumulator across point tiles.
    # TODO(synk): one-hot matmul is O(V*N); for production grids (D=64 -> V=262144)
    # a sort + segment_sum outside Pallas is the better scatter-add.
    n = pl.program_id(1)

    @pl.when(n == 0)
    def _():
        acc_ref[...] = jnp.zeros_like(acc_ref)

    base = pl.program_id(0) * tv
    tn = idx_ref.shape[1]
    vi = jax.lax.broadcasted_iota(jnp.int32, (tv, tn), 0) + base
    onehot = (vi == idx_ref[...]).astype(jnp.float32)                 # (tv, tn)
    acc_ref[...] += jnp.dot(onehot, feat_ref[...],
                            preferred_element_type=jnp.float32)

    @pl.when(n == pl.num_programs(1) - 1)
    def _():
        out_ref[...] = acc_ref[...]


def mlp2_kernel(x_ref, w1_ref, b1_ref, w2_ref, b2_ref, y_ref, h_ref):
    # fused: matmul -> bias -> relu -> matmul -> bias; hidden stays in VMEM/vregs.
    h = jnp.dot(x_ref[...], w1_ref[...], preferred_element_type=jnp.float32) + b1_ref[...]
    h = jnp.maximum(h, 0.0)
    h_ref[...] = h
    y_ref[...] = jnp.dot(h, w2_ref[...], preferred_element_type=jnp.float32) + b2_ref[...]


def mlp2_kernel_noh(x_ref, w1_ref, b1_ref, w2_ref, b2_ref, y_ref):
    h = jnp.maximum(
        jnp.dot(x_ref[...], w1_ref[...], preferred_element_type=jnp.float32) + b1_ref[...],
        0.0)
    y_ref[...] = jnp.dot(h, w2_ref[...], preferred_element_type=jnp.float32) + b2_ref[...]


def splat_kernel(cen_ref, isig_ref, opa_ref, col_ref, bg_ref, o_ref, acc_ref, *, tp, width):
    # grid: (view, pixel_tile, gaussian_tile); gaussian axis is the reduction.
    # layout (gaussians on sublanes, pixels on lanes):
    #   cen (1, tn, 2), isig (1, tn, 1), opa (tn, 1), col (4, tn) rows [r, g, b, 1],
    #   bg (3, 1), o (1, 3, tp) lane-dense, acc scratch (4, tp) f32.
    n = pl.program_id(2)

    @pl.when(n == 0)
    def _():
        acc_ref[...] = jnp.zeros_like(acc_ref)

    # pixel centers for this tile, generated in-kernel (no pixel-grid input DMA).
    pix = (jax.lax.broadcasted_iota(jnp.float32, (1, tp), 1)
           + (pl.program_id(1) * tp).astype(jnp.float32))             # flat pixel index
    row = jnp.floor((pix + 0.5) / float(width))
    py = row + 0.5                                                    # (1, tp)
    px = pix - row * float(width) + 0.5                               # (1, tp)

    cen = cen_ref[...][0]                                             # (tn, 2)
    cx = cen[:, 0:1]                                                  # (tn, 1)
    cy = cen[:, 1:2]                                                  # (tn, 1)
    isig = isig_ref[...][0]                                           # (tn, 1)
    opa = opa_ref[...]                                                # (tn, 1)

    # TODO(synk): weight math kept f32 for v5e; on v6e/v7x bf16 d2/exp would ~2x EUP.
    d2 = (px - cx) ** 2 + (py - cy) ** 2                              # (tn, tp)
    w = opa * jnp.exp(-d2 * isig)                                     # (tn, tp)
    # rgb accumulation AND weight-sum in one MXU matmul (col row 3 is all-ones).
    acc_ref[...] += jnp.dot(col_ref[...], w, preferred_element_type=jnp.float32)

    @pl.when(n == pl.num_programs(2) - 1)
    def _():
        tot = acc_ref[...]                                            # (4, tp)
        wsum = tot[3:4, :]
        bg_w = jnp.maximum(1.0 - wsum, 0.0)
        inv = pl.reciprocal(wsum + bg_w, approx=True)
        o_ref[...] = ((tot[0:3, :] + bg_w * bg_ref[...]) * inv)[None]  # (1, 3, tp)


# ----------------------------- Pallas wrappers -------------------------------

def pallas_voxelize(flat_idx, feats, num_voxels, tv=128, tn=2048):
    N, C = feats.shape
    tn_eff = min(tn, _round_up(N, 128))
    Np = _round_up(N, tn_eff)
    tv_eff = min(tv, _round_up(num_voxels, 8))
    Vp = _round_up(num_voxels, tv_eff)
    idx_p = jnp.full((1, Np), -1, jnp.int32).at[0, :N].set(flat_idx.astype(jnp.int32))
    feat_p = jnp.zeros((Np, C), jnp.float32).at[:N].set(feats.astype(jnp.float32))
    out = pl.pallas_call(
        functools.partial(voxelize_kernel, tv=tv_eff),
        out_shape=jax.ShapeDtypeStruct((Vp, C), jnp.float32),
        grid=(Vp // tv_eff, Np // tn_eff),
        in_specs=[pl.BlockSpec((1, tn_eff), lambda i, n: (0, n)),
                  pl.BlockSpec((tn_eff, C), lambda i, n: (n, 0))],
        out_specs=pl.BlockSpec((tv_eff, C), lambda i, n: (i, 0)),
        scratch_shapes=[pltpu.VMEM((tv_eff, C), jnp.float32)],
        compiler_params=pltpu.CompilerParams(
            dimension_semantics=("parallel", "arbitrary")),
    )(idx_p, feat_p)
    return out[:num_voxels]


def pallas_mlp2(x, w1, b1, w2, b2, want_hidden=False, tm=512):
    # fused two-layer MLP: y = (relu(x @ w1 + b1)) @ w2 + b2, optionally also returning
    # the hidden activation. Rows padded to the tile size instead of asserting.
    M, K = x.shape
    Hd = w1.shape[1]
    Od = w2.shape[1]
    tm_eff = tm if M >= tm else max(8, _round_up(M, 8))
    Mp = _round_up(M, tm_eff)
    xp = jnp.zeros((Mp, K), jnp.float32).at[:M].set(x.astype(jnp.float32))
    grid = (Mp // tm_eff,)
    in_specs = [pl.BlockSpec((tm_eff, K), lambda i: (i, 0)),
                pl.BlockSpec((K, Hd), lambda i: (0, 0)),
                pl.BlockSpec((1, Hd), lambda i: (0, 0)),
                pl.BlockSpec((Hd, Od), lambda i: (0, 0)),
                pl.BlockSpec((1, Od), lambda i: (0, 0))]
    cp = pltpu.CompilerParams(dimension_semantics=("parallel",))
    args = (xp, w1.astype(jnp.float32), b1.reshape(1, Hd).astype(jnp.float32),
            w2.astype(jnp.float32), b2.reshape(1, Od).astype(jnp.float32))
    if want_hidden:
        y, h = pl.pallas_call(
            mlp2_kernel,
            out_shape=(jax.ShapeDtypeStruct((Mp, Od), jnp.float32),
                       jax.ShapeDtypeStruct((Mp, Hd), jnp.float32)),
            grid=grid, in_specs=in_specs,
            out_specs=(pl.BlockSpec((tm_eff, Od), lambda i: (i, 0)),
                       pl.BlockSpec((tm_eff, Hd), lambda i: (i, 0))),
            compiler_params=cp)(*args)
        return y[:M], h[:M]
    y = pl.pallas_call(
        mlp2_kernel_noh,
        out_shape=jax.ShapeDtypeStruct((Mp, Od), jnp.float32),
        grid=grid, in_specs=in_specs,
        out_specs=pl.BlockSpec((tm_eff, Od), lambda i: (i, 0)),
        compiler_params=cp)(*args)
    return y[:M]


def pallas_splat_views(centers, isig, opa, col_aug, bg, height, width, tp=256, tn=512):
    # centers (Vv, N, 2), isig (Vv, N, 1), opa (N, 1), col_aug (4, N) rows [r, g, b, 1],
    # bg (3, 1) -> (Vv, 3, H*W) channel-first, lane-dense image.
    Vv, N, _ = centers.shape
    P = height * width
    tn_eff = min(tn, _round_up(N, 128))
    Np = _round_up(N, tn_eff)
    tp_eff = min(tp, _round_up(P, 128))
    Pp = _round_up(P, tp_eff)
    # padded gaussians get opacity 0 -> zero weight -> no contribution.
    cen_p = jnp.zeros((Vv, Np, 2), jnp.float32).at[:, :N].set(centers.astype(jnp.float32))
    isig_p = jnp.zeros((Vv, Np, 1), jnp.float32).at[:, :N].set(isig.astype(jnp.float32))
    opa_p = jnp.zeros((Np, 1), jnp.float32).at[:N].set(opa.astype(jnp.float32))
    col_p = jnp.zeros((4, Np), jnp.float32).at[:, :N].set(col_aug.astype(jnp.float32))
    out = pl.pallas_call(
        functools.partial(splat_kernel, tp=tp_eff, width=width),
        out_shape=jax.ShapeDtypeStruct((Vv, 3, Pp), jnp.float32),
        grid=(Vv, Pp // tp_eff, Np // tn_eff),
        in_specs=[pl.BlockSpec((1, tn_eff, 2), lambda v, p, n: (v, n, 0)),
                  pl.BlockSpec((1, tn_eff, 1), lambda v, p, n: (v, n, 0)),
                  pl.BlockSpec((tn_eff, 1), lambda v, p, n: (n, 0)),
                  pl.BlockSpec((4, tn_eff), lambda v, p, n: (0, n)),
                  pl.BlockSpec((3, 1), lambda v, p, n: (0, 0))],
        out_specs=pl.BlockSpec((1, 3, tp_eff), lambda v, p, n: (v, 0, p)),
        scratch_shapes=[pltpu.VMEM((4, tp_eff), jnp.float32)],
        compiler_params=pltpu.CompilerParams(
            dimension_semantics=("parallel", "parallel", "arbitrary"),
            vmem_limit_bytes=32 * 1024 * 1024),
    )(cen_p, isig_p, opa_p, col_p, bg.astype(jnp.float32))
    return out[:, :, :P]


# ----------------------------- Module -------------------------------

class GaussianRendererPallas:
    def __init__(self, cfg, key):
        self.cfg = cfg
        self.bg_color = jnp.asarray(cfg.dataset.bg_color, jnp.float32)
        self.znear = cfg.cam.znear
        self.zfar = cfg.cam.zfar
        self.trans = jnp.asarray(cfg.dataset.trans, jnp.float32)
        self.scale = cfg.dataset.scale

        D = cfg.gaussian_renderer.voxel_dim
        fd = cfg.gaussian_renderer.final_dim
        c_img = cfg.gaussian_renderer.image_feature_dim
        hid = cfg.gaussian_renderer.regressor_hidden
        self.voxel_dim = D
        self.final_dim = fd
        # regressor output: 3 xyz-offset + 4 rot + 3 scale + 1 opacity + 3 sh(dc)
        self.param_dim = 3 + 4 + 3 + 1 + 3

        ks = jax.random.split(key, 4)

        def winit(k, shape):
            return jax.random.normal(k, shape, jnp.float32) / jnp.sqrt(shape[0])

        # TODO(synk): real MultiLayer3DEncoderShallow uses 3x3x3 3D convs whose exact
        # architecture is not provided; implemented as a shallow pointwise-conv stack.
        self.enc_w1 = winit(ks[0], (7, fd)); self.enc_b1 = jnp.zeros((fd,), jnp.float32)
        self.enc_w2 = winit(ks[1], (fd, fd)); self.enc_b2 = jnp.zeros((fd,), jnp.float32)
        in_dim = 3 + fd + c_img
        self.reg_w1 = winit(ks[2], (in_dim, hid)); self.reg_b1 = jnp.zeros((hid,), jnp.float32)
        self.reg_w2 = winit(ks[3], (hid, self.param_dim))
        self.reg_b2 = jnp.zeros((self.param_dim,), jnp.float32)

    # ------------------------- voxelizer (VoxelGrid surrogate) -------------------------
    def _voxelize(self, pcds_1nd):
        # pcds_1nd: (1, N, 3) world coords -> (1, 7, D, D, D) NCDHW grid
        cfg = self.cfg
        D = self.voxel_dim
        bmin = jnp.asarray(cfg.rlbench.scene_bounds[:3], jnp.float32)
        bmax = jnp.asarray(cfg.rlbench.scene_bounds[3:], jnp.float32)
        pts = pcds_1nd[0]
        N = pts.shape[0]
        rel = (pts - bmin) / (bmax - bmin)
        vox = jnp.clip(jnp.floor(rel * D), 0, D - 1).astype(jnp.int32)
        flat = vox[:, 0] * D * D + vox[:, 1] * D + vox[:, 2]
        # accumulands: [x, y, z, count, 4 pad lanes]
        feats = jnp.concatenate(
            [pts, jnp.ones((N, 1), jnp.float32), jnp.zeros((N, 4), jnp.float32)], axis=1)
        acc = pallas_voxelize(flat, feats, D ** 3)                   # (V, 8)
        cnt = acc[:, 3:4]
        occ = jnp.clip(cnt, 0.0, 1.0)
        mean_xyz = acc[:, 0:3] / jnp.maximum(cnt, 1.0)
        ii = jnp.arange(D ** 3)
        ix = (ii // (D * D)).astype(jnp.float32)
        iy = ((ii // D) % D).astype(jnp.float32)
        iz = (ii % D).astype(jnp.float32)
        idx_coords = jnp.stack([ix, iy, iz], axis=1) / (D - 1) * 2.0 - 1.0
        grid = jnp.concatenate([mean_xyz, idx_coords, occ], axis=1)   # (V, 7)
        grid = grid.reshape(D, D, D, 7).transpose(3, 0, 1, 2)[None]   # (1, 7, D, D, D)
        return grid

    # ------------------------- voxel encoder -------------------------
    def _voxel_encoder(self, voxel_grids):
        # (B, 7, D, D, D) -> (B, final_dim, D, D, D), list of multi-scale features
        B, C, D, _, _ = voxel_grids.shape
        x = voxel_grids.transpose(0, 2, 3, 4, 1).reshape(B * D ** 3, C)
        y, h = pallas_mlp2(x, self.enc_w1, self.enc_b1, self.enc_w2, self.enc_b2,
                           want_hidden=True, tm=512)
        vf = y.reshape(B, D, D, D, self.final_dim).transpose(0, 4, 1, 2, 3)
        ms = [h.reshape(B, D, D, D, -1).transpose(0, 4, 1, 2, 3)]
        return vf, ms

    # ------------------------- gaussian regressor -------------------------
    def _gaussian_regressor(self, pcds, pcds_project_to_image, voxel_feature, image_feature):
        # pcds (1,N,3), pcds_project_to_image (1,N,2), voxel_feature (1,fd,D,D,D),
        # image_feature (1,C_img,H,W)
        cfg = self.cfg
        D = self.voxel_dim
        pts = pcds[0]
        N = pts.shape[0]
        bmin = jnp.asarray(cfg.rlbench.scene_bounds[:3], jnp.float32)
        bmax = jnp.asarray(cfg.rlbench.scene_bounds[3:], jnp.float32)
        rel = (pts - bmin) / (bmax - bmin)
        vox = jnp.clip(jnp.floor(rel * D), 0, D - 1).astype(jnp.int32)
        flat = vox[:, 0] * D * D + vox[:, 1] * D + vox[:, 2]
        vf = voxel_feature[0].reshape(self.final_dim, D ** 3).T        # (V, fd)
        vox_feat = jnp.take(vf, flat, axis=0)                          # (N, fd)
        H, W = image_feature.shape[2], image_feature.shape[3]
        uv = pcds_project_to_image[0]
        iu = jnp.clip(jnp.round(uv[:, 0]), 0, W - 1).astype(jnp.int32)
        iv = jnp.clip(jnp.round(uv[:, 1]), 0, H - 1).astype(jnp.int32)
        img_feat = image_feature[0][:, iv, iu].T                       # (N, C_img)
        feat = jnp.concatenate([rel * 2.0 - 1.0, vox_feat, img_feat], axis=1)
        raw = pallas_mlp2(feat, self.reg_w1, self.reg_b1, self.reg_w2, self.reg_b2,
                          want_hidden=False, tm=512)                   # (N, 14)
        xyz = pts + 0.05 * jnp.tanh(raw[:, 0:3])
        rot = raw[:, 3:7]
        rot = rot / (jnp.linalg.norm(rot, axis=-1, keepdims=True) + 1e-8)
        scale = 0.02 * jax.nn.sigmoid(raw[:, 7:10]) + 1e-3
        opacity = jax.nn.sigmoid(raw[:, 10:11])
        sh = raw[:, 11:14].reshape(N, 1, 3)                            # degree-0 SH
        params = {
            'xyz_maps': xyz[None],          # (1, N, 3)
            'sh_maps': sh[None],            # (1, N, 1, 3)
            'rot_maps': rot[None],          # (1, N, 4)
            'scale_maps': scale[None],      # (1, N, 3)
            'opacity_maps': opacity[None],  # (1, N, 1)
        }
        # TODO(synk): original GaussianRegressor's auxiliary test_loss is undefined here.
        test_loss = jnp.float32(0.0)
        return params, test_loss

    # ------------------------- camera calib (plain-JAX glue) -------------------------
    def _projection_matrix(self, K, h, w):
        B = K.shape[0]
        znear, zfar = self.znear, self.zfar
        fx, fy = K[:, 0, 0], K[:, 1, 1]
        cx, cy = K[:, 0, 2], K[:, 1, 2]
        P = jnp.zeros((B, 4, 4), jnp.float32)
        P = P.at[:, 0, 0].set(2 * fx / w)
        P = P.at[:, 1, 1].set(2 * fy / h)
        P = P.at[:, 0, 2].set(2 * cx / w - 1)
        P = P.at[:, 1, 2].set(2 * cy / h - 1)
        P = P.at[:, 2, 2].set(zfar / (zfar - znear))
        P = P.at[:, 2, 3].set(-zfar * znear / (zfar - znear))
        P = P.at[:, 3, 2].set(1.0)
        return P

    def get_rendering_calib(self, intr, extr):
        # intr (B,3,3), extr c2w (B,4,4) -> dict mirroring the PyTorch version
        H = self.cfg.rlbench.camera_resolution[0]
        W = self.cfg.rlbench.camera_resolution[1]
        w2c = jnp.linalg.inv(extr)
        fovx = 2.0 * jnp.arctan(W / (2.0 * intr[:, 0, 0]))
        fovy = 2.0 * jnp.arctan(H / (2.0 * intr[:, 1, 1]))
        world_view_transform = jnp.swapaxes(w2c, 1, 2)
        proj = self._projection_matrix(intr, H, W)
        full_proj_transform = jnp.einsum('bij,bjk->bik', world_view_transform,
                                         jnp.swapaxes(proj, 1, 2))
        camera_center = jnp.linalg.inv(world_view_transform)[:, 3, :3]
        return {'FovX': fovx, 'FovY': fovy,
                'width': jnp.full((extr.shape[0],), W, jnp.int32),
                'height': jnp.full((extr.shape[0],), H, jnp.int32),
                'world_view_transform': world_view_transform,
                'full_proj_transform': full_proj_transform,
                'camera_center': camera_center,
                'intr': intr, 'w2c': w2c}

    # ------------------------- renderer -------------------------
    def _render_views(self, x, w2c_list, intr_list, bg_color):
        # TODO(synk): CUDA diff-gaussian-rasterization (depth-sorted alpha compositing,
        # anisotropic covariances) has no clean Pallas equivalent; simplified isotropic
        # soft-splatting (tiled gaussian-weight matmul) is used instead.
        cfg = self.cfg
        Hres = cfg.rlbench.camera_resolution[0]
        Wres = cfg.rlbench.camera_resolution[1]
        xyz = x['xyz_maps'][0]            # (N, 3)
        sh = x['sh_maps'][0]              # (N, 1, 3)
        scale = x['scale_maps'][0]        # (N, 3)
        opacity = x['opacity_maps'][0]    # (N, 1)
        N = xyz.shape[0]

        w2c = jnp.stack(list(w2c_list), axis=0)       # (Vv, 4, 4)
        intr = jnp.stack(list(intr_list), axis=0)     # (Vv, 3, 3)
        cam = jnp.einsum('vij,nj->vni', w2c[:, :3, :3], xyz) + w2c[:, None, :3, 3]
        depth = jnp.maximum(cam[..., 2], self.znear)  # (Vv, N)
        fx = intr[:, 0, 0][:, None]; fy = intr[:, 1, 1][:, None]
        cx = intr[:, 0, 2][:, None]; cy = intr[:, 1, 2][:, None]
        u = fx * cam[..., 0] / depth + cx
        v = fy * cam[..., 1] / depth + cy
        centers = jnp.stack([u, v], axis=-1)          # (Vv, N, 2)
        sigma_pix = jnp.maximum(jnp.mean(scale, axis=-1)[None, :] * fx / depth, 0.5)
        isig = (1.0 / (2.0 * sigma_pix ** 2))[..., None]              # (Vv, N, 1)

        colors = jnp.clip(SH_C0 * sh[:, 0, :] + 0.5, 0.0, 1.0)        # (N, 3)
        col_aug = jnp.concatenate([colors.T, jnp.ones((1, N), jnp.float32)], axis=0)
        bg = jnp.asarray(bg_color, jnp.float32).reshape(3, 1)
        img = pallas_splat_views(centers, isig, opacity, col_aug, bg, Hres, Wres)
        return img.reshape(-1, 3, Hres, Wres)         # (Vv, 3, H, W)

    def pts2render(self, x, bg_color=(0.0, 0.0, 0.0)):
        calib = x['rendering_calib']
        img = self._render_views(x, [calib['w2c'][0]], [calib['intr'][0]], bg_color)
        x['img_pred'] = img[0:1]                       # (1, 3, H, W)
        return x

    # ------------------------- forward -------------------------
    def forward(self, data, pcds, pcds_project_to_image, feature_map):
        pcds_flat = [p[None] for p in pcds]
        voxel_grids = jnp.concatenate([self._voxelize(p) for p in pcds_flat], axis=0)
        voxel_feature, multi_scale_voxel_list = self._voxel_encoder(voxel_grids)
        predict_render_images = []
        new_pcds = []
        gaussian_params_list = []
        debug_loss = jnp.float32(0.0)
        for i in range(len(pcds)):
            _pcds = pcds_flat[i]
            _pcds_project_to_image = pcds_project_to_image[i][0]      # squeeze(0)
            _voxel_feature = voxel_feature[i]
            _image_feature = feature_map[i]
            gaussian_params, test_loss = self._gaussian_regressor(
                pcds=_pcds,
                pcds_project_to_image=_pcds_project_to_image[None],
                voxel_feature=_voxel_feature[None],
                image_feature=_image_feature[None])
            debug_loss = debug_loss + test_loss
            new_pcds.append(gaussian_params['xyz_maps'][0])
            gaussian_params_list.append(gaussian_params)

            # All gt views of this batch item are rendered by ONE splat pallas_call
            # (leading "parallel" view grid axis amortizes launch overhead and keeps
            # gaussian data DMAs shared across views).
            w2c_list, intr_list, calib = [], [], None
            for j in range(len(data[i]['gt_view'])):
                extr_matrix = data[i]['gt_view'][j]['pose'][0][None]
                intr_matrix = data[i]['gt_view'][j]['pose'][1][None]
                calib = self.get_rendering_calib(extr=extr_matrix, intr=intr_matrix)
                w2c_list.append(calib['w2c'][0])
                intr_list.append(calib['intr'][0])
            imgs_chw = self._render_views(gaussian_params, w2c_list, intr_list,
                                          self.bg_color)              # (n_views, 3, H, W)
            gaussian_params['rendering_calib'] = calib                 # last view (as in ref)
            gaussian_params['img_pred'] = imgs_chw[-1:]                # last view (as in ref)
            predict_render_images.append(
                jnp.transpose(imgs_chw, (0, 2, 3, 1))[None])           # (1, n_views, H, W, 3)
        predict_render_images = jnp.concatenate(predict_render_images, axis=0)
        return predict_render_images, new_pcds, gaussian_params_list, debug_loss


if __name__ == "__main__":
    cfg = SimpleNamespace(
        dataset=SimpleNamespace(bg_color=[0.0, 0.0, 0.0], trans=[0.0, 0.0, 0.0], scale=1.0),
        cam=SimpleNamespace(znear=0.01, zfar=10.0),
        rlbench=SimpleNamespace(scene_bounds=[-0.5, -0.5, 0.5, 0.5, 0.5, 1.5],
                                camera_resolution=[16, 16]),
        gaussian_renderer=SimpleNamespace(voxel_sizes=8, voxel_dim=8, final_dim=32,
                                          image_feature_dim=8, regressor_hidden=64),
    )
    B, N, H, W, C_img = 2, 128, 16, 16, 8
    key = jax.random.PRNGKey(0)
    k_pts, k_feat = jax.random.split(key, 2)
    bmin = jnp.asarray(cfg.rlbench.scene_bounds[:3], jnp.float32)
    bmax = jnp.asarray(cfg.rlbench.scene_bounds[3:], jnp.float32)
    pts_all = jax.random.uniform(k_pts, (B, N, 3), jnp.float32) * (bmax - bmin) + bmin
    pcds = [pts_all[i] for i in range(B)]
    feature_map = jax.random.normal(k_feat, (B, C_img, H, W), jnp.float32)

    # ground-truth camera: c2w = identity (camera at origin looking +z)
    extr = jnp.eye(4, dtype=jnp.float32)
    intr = jnp.asarray([[16.0, 0.0, 8.0],
                        [0.0, 16.0, 8.0],
                        [0.0, 0.0, 1.0]], jnp.float32)
    pcds_project_to_image = []
    for i in range(B):
        p = pcds[i]
        u = intr[0, 0] * p[:, 0] / p[:, 2] + intr[0, 2]
        v = intr[1, 1] * p[:, 1] / p[:, 2] + intr[1, 2]
        pcds_project_to_image.append(jnp.stack([u, v], axis=1)[None])  # (1, N, 2)

    data = [{'gt_view': [{'pose': (extr, intr)}, {'pose': (extr, intr)}]} for _ in range(B)]

    model = GaussianRendererPallas(cfg, jax.random.PRNGKey(1))
    imgs, new_pcds, gparams, dbg_loss = model.forward(
        data, pcds, pcds_project_to_image, feature_map)
    jax.block_until_ready(imgs)
    jax.block_until_ready(dbg_loss)
    assert imgs.shape == (B, 2, H, W, 3)
    assert all(p.shape == (N, 3) for p in new_pcds)
    assert bool(jnp.all(jnp.isfinite(imgs)))
    print("KERNEL_OK")
</pallas_src>

<mosaic_0001>
module attributes {stable_mosaic.version = 11 : i64} {
  func.func @voxelize_kernel(%arg0: i32, %arg1: i32, %arg2: memref<1x128xi32, #tpu.memory_space<vmem>>, %arg3: memref<128x8xf32, #tpu.memory_space<vmem>>, %arg4: memref<128x8xf32, #tpu.memory_space<vmem>>, %arg5: memref<128x8xf32, #tpu.memory_space<vmem>>) attributes {dimension_semantics = [#tpu.dimension_semantics<parallel>, #tpu.dimension_semantics<arbitrary>], iteration_bounds = array<i64: 4, 1>, scalar_prefetch = 0 : i64, scratch_operands = 1 : i64, tpu.core_type = #tpu.core_type<tc>, window_params = [{transform_indices = @transform_0, window_bounds = array<i64: 1, 128>}, {transform_indices = @transform_1, window_bounds = array<i64: 128, 8>}, {transform_indices = @transform_2, window_bounds = array<i64: 128, 8>}]} {
    %c0_i32 = arith.constant 0 : i32
    %0 = arith.cmpi eq, %arg1, %c0_i32 : i32
    %1 = arith.extui %0 : i1 to i32
    %c0_i32_0 = arith.constant 0 : i32
    %2 = arith.cmpi ne, %1, %c0_i32_0 : i32
    scf.if %2 {
      %cst_10 = arith.constant 0.000000e+00 : f32
      %20 = vector.broadcast %cst_10 : f32 to vector<128x8xf32>
      %c0_11 = arith.constant 0 : index
      %c0_12 = arith.constant 0 : index
      %21 = vector.load %arg5[%c0_11, %c0_12] : memref<128x8xf32, #tpu.memory_space<vmem>>, vector<128x8xf32>
      tpu.vector_store %arg5[%c0_11, %c0_12], %20 {strides = array<i32>} : memref<128x8xf32, #tpu.memory_space<vmem>>, vector<128x8xf32>,
    } else {
    }
    %c128_i32 = arith.constant 128 : i32
    %3 = arith.muli %arg0, %c128_i32 : i32
    %4 = tpu.iota {dimensions = array<i32: 0>} : vector<128x128xi32>
    %5 = vector.broadcast %3 : i32 to vector<128x128xi32>
    %6 = arith.addi %4, %5 : vector<128x128xi32>
    %c0 = arith.constant 0 : index
    %c0_1 = arith.constant 0 : index
    %7 = vector.load %arg2[%c0, %c0_1] : memref<1x128xi32, #tpu.memory_space<vmem>>, vector<1x128xi32>
    %8 = vector.broadcast %7 : vector<1x128xi32> to vector<128x128xi32>
    %9 = arith.cmpi eq, %6, %8 : vector<128x128xi32>
    %10 = arith.extui %9 : vector<128x128xi1> to vector<128x128xi32>
    %11 = arith.sitofp %10 : vector<128x128xi32> to vector<128x128xf32>
    %c0_2 = arith.constant 0 : index
    %c0_3 = arith.constant 0 : index
    %12 = vector.load %arg5[%c0_2, %c0_3] : memref<128x8xf32, #tpu.memory_space<vmem>>, vector<128x8xf32>
    %c0_4 = arith.constant 0 : index
    %c0_5 = arith.constant 0 : index
    %13 = vector.load %arg3[%c0_4, %c0_5] : memref<128x8xf32, #tpu.memory_space<vmem>>, vector<128x8xf32>
    %cst = arith.constant dense<0.000000e+00> : vector<128x8xf32>
    %14 = tpu.matmul %11, %13, %cst {dimension_numbers = #tpu.dot_dimension_numbers<[1], [0], [0], [1], [0, 0, 1, 1], [], []>} : vector<128x128xf32>, vector<128x8xf32>, vector<128x8xf32> -> vector<128x8xf32>
    %15 = arith.addf %12, %14 : vector<128x8xf32>
    %c0_6 = arith.constant 0 : index
    %c0_7 = arith.constant 0 : index
    %16 = vector.load %arg5[%c0_6, %c0_7] : memref<128x8xf32, #tpu.memory_space<vmem>>, vector<128x8xf32>
    tpu.vector_store %arg5[%c0_6, %c0_7], %15 {strides = array<i32>} : memref<128x8xf32, #tpu.memory_space<vmem>>, vector<128x8xf32>,
    %c0_i32_8 = arith.constant 0 : i32
    %17 = arith.cmpi eq, %arg1, %c0_i32_8 : i32
    %18 = arith.extui %17 : i1 to i32
    %c0_i32_9 = arith.constant 0 : i32
    %19 = arith.cmpi ne, %18, %c0_i32_9 : i32
    scf.if %19 {
      %c0_10 = arith.constant 0 : index
      %c0_11 = arith.constant 0 : index
      %20 = vector.load %arg5[%c0_10, %c0_11] : memref<128x8xf32, #tpu.memory_space<vmem>>, vector<128x8xf32>
      %c0_12 = arith.constant 0 : index
      %c0_13 = arith.constant 0 : index
      %21 = vector.load %arg4[%c0_12, %c0_13] : memref<128x8xf32, #tpu.memory_space<vmem>>, vector<128x8xf32>
      tpu.vector_store %arg4[%c0_12, %c0_13], %20 {strides = array<i32>} : memref<128x8xf32, #tpu.memory_space<vmem>>, vector<128x8xf32>,
    } else {
    }
    return
  }
  func.func @transform_0(%arg0: i32, %arg1: i32) -> (i32, i32) {
    %c0_i32 = arith.constant 0 : i32
    %c0_i32_0 = arith.constant 0 : i32
    return %c0_i32, %arg1 : i32, i32
  }
  func.func @transform_1(%arg0: i32, %arg1: i32) -> (i32, i32) {
    %c0_i32 = arith.constant 0 : i32
    %c0_i32_0 = arith.constant 0 : i32
    return %arg1, %c0_i32 : i32, i32
  }
  func.func @transform_2(%arg0: i32, %arg1: i32) -> (i32, i32) {
    %c0_i32 = arith.constant 0 : i32
    %c0_i32_0 = arith.constant 0 : i32
    return %arg0, %c0_i32 : i32, i32
  }
}

</mosaic_0001>

<bundles_post_ra>
// kernel: tpu_custom_call.1
= control target key start
LH: loop header
LB: loop body
LE: loop exit
PB: predicated region body
PF: predicated region fallthrough
CT: control target
= control target key end

     0   :  { %s854_s9 = smov 0   ;;  %s856_s10 = smov 0   ;;  %s1078_s0 = inlined_call_operand.vmem [shape: s32[1,128], index: 0, kind: input, shape index: {}]   ;;  %s1079_s1 = inlined_call_operand.vmem [shape: f32[128,8], index: 1, kind: input, shape index: {}]   ;;  %s1080_s2 = inlined_call_operand.vmem [shape: f32[512,8], index: 2, kind: output, shape index: {}]  }
   0x1   :  { %s858_s11 = smov 0  }
   0x2 LB: > { %s24_s12 = sadd.s32 1, %s831_s10  ;;  %p612_p0 = scmp.ge.s32.totalorder %s835_s11, 1  ;;  %s835_s11 = sphi %s858_s11, %s12_s11   ;;  %s831_s10 = sphi %s856_s10, %s1082_s10   ;;  %s827_s9 = sphi %s854_s9, %s1081_s9  }
   0x3   : > { %p26_p1 = scmp.ge.s32.totalorder %s24_s12, 4  ;;  %p133_p2 = scmp.lt.s32.totalorder %s835_s11, 5 }
   0x5   : > { %s1084_s12 = smov (%p26_p1, %s24_s12), 0  ;;  %p134_p3 = pnand %p612_p0, %p133_p2 }
   0x6   : > { %v298_v0 = vld [vmem:[%s1079_s1] sm:$0xff] (!%p134_p3)  ;;  %v299_v1 = vld [vmem:[%s1079_s1 + $0x8] sm:$0xff] (!%p134_p3)  ;;  %v300_v2 = vld [vmem:[%s1079_s1 + $0x10] sm:$0xff] (!%p134_p3)  ;;  %s615_s19 = sshll.u32 (!%p134_p3), %s827_s9, 7  ;;  %v195_v3 = vlaneseq (!%p134_p3)  ;;  %vm177_vm0 = vcmask (!%p134_p3), 64512   ;;  %v837_v11 = vmov (!%p134_p3), 0.0  }
   0x7   : > { %137 = sbr.rel (%p134_p3) target bundleno = 280 (0x118), region = 28  ;;  %v739_v4 = vpack.c.bf16 (!%p134_p3), %v299_v1, %v298_v0  ;;  %v301_v5 = vld [vmem:[%s1079_s1 + $0x18] sm:$0xff] (!%p134_p3)  ;;  %v887_v6 = vstv (!%p134_p3), %s615_s19  ;;  %v302_v8 = vld [vmem:[%s1079_s1 + $0x20] sm:$0xff] (!%p134_p3)  ;;  %v303_v9 = vld [vmem:[%s1079_s1 + $0x28] sm:$0xff] (!%p134_p3)  ;;  %179 = vst.msk [vmem:[#allocation2 + $0x8] sm:$0xff] (!%p134_p3), %vm177_vm0, %v837_v11  ;;  %v838_v19 = vmov (!%p134_p3), 1.0  }
   0x8   : > { %v743_v7 = vpack.c.bf16 (!%p134_p3), %v301_v5, %v300_v2  ;;  %v895_v10 = vshrl.u32 (!%p134_p3), %v195_v3, 7  ;;  %178 = vst.msk [vmem:[#allocation2] sm:$0xff] (!%p134_p3), %vm177_vm0, %v837_v11  ;;  %180 = vst.msk [vmem:[#allocation2 + $0x10] sm:$0xff] (!%p134_p3), %vm177_vm0, %v837_v11  ;;  %v747_v14 = vpack.c.bf16 (!%p134_p3), %v303_v9, %v302_v8  ;;  %v919_v15 = vld [vmem:[%s1078_s0] ss:$0 sm:$0xff] (!%p134_p3)  ;;  %v304_v16 = vld [vmem:[%s1079_s1 + $0x30] sm:$0xff] (!%p134_p3) }
   0x9   : > { %181 = vst.msk [vmem:[#allocation2 + $0x18] sm:$0xff] (!%p134_p3), %vm177_vm0, %v837_v11  ;;  %182 = vst.msk [vmem:[#allocation2 + $0x20] sm:$0xff] (!%p134_p3), %vm177_vm0, %v837_v11  ;;  %740 = vmatprep.subr.bf16.mxu0 (!%p134_p3), %v739_v4  ;;  %771 = vmatprep.subr.bf16.mxu1 (!%p134_p3), %v739_v4  ;;  %v305_v17 = vld [vmem:[%s1079_s1 + $0x38] sm:$0xff] (!%p134_p3)  ;;  %v306_v21 = vld [vmem:[%s1079_s1 + $0x40] sm:$0xff] (!%p134_p3)  ;;  %s613_s24 = sshll.u32 (!%p134_p3), %s827_s9, 4 }
   0xa   : > { %183 = vst.msk [vmem:[#allocation2 + $0x28] sm:$0xff] (!%p134_p3), %vm177_vm0, %v837_v11  ;;  %184 = vst.msk [vmem:[#allocation2 + $0x30] sm:$0xff] (!%p134_p3), %vm177_vm0, %v837_v11  ;;  %742 = vmatpush3.bf16.msra.mxu0 (!%p134_p3), %v739_v4  ;;  %779 = vmatpush3.bf16.msra.mxu1 (!%p134_p3), %v739_v4  ;;  %v213_v12 = vadd.s32 (!%p134_p3), %v887_v6, %v895_v10  ;;  %v204_v13 = vadd.s32 (!%p134_p3), 64, %v895_v10  ;;  %v751_v20 = vpack.c.bf16 (!%p134_p3), %v305_v17, %v304_v16  ;;  %v307_v22 = vld [vmem:[%s1079_s1 + $0x48] sm:$0xff] (!%p134_p3)  ;;  %v308_v24 = vld [vmem:[%s1079_s1 + $0x50] sm:$0xff] (!%p134_p3)  ;;  %p168_p4 = scmp.lt.s32.totalorder (!%p134_p3), %s613_s24, 63 }
   0xb   : > { %185 = vst.msk [vmem:[#allocation2 + $0x38] sm:$0xff] (!%p134_p3), %vm177_vm0, %v837_v11  ;;  %186 = vst.msk [vmem:[#allocation2 + $0x40] sm:$0xff] (!%p134_p3), %vm177_vm0, %v837_v11  ;;  %744 = vmatprep.subr.bf16.mxu0 (!%p134_p3), %v743_v7  ;;  %772 = vmatprep.subr.bf16.mxu1 (!%p134_p3), %v743_v7  ;;  %v755_v23 = vpack.c.bf16 (!%p134_p3), %v307_v22, %v306_v21  ;;  %v309_v25 = vld [vmem:[%s1079_s1 + $0x58] sm:$0xff] (!%p134_p3)  ;;  %v310_v27 = vld [vmem:[%s1079_s1 + $0x60] sm:$0xff] (!%p134_p3)  ;;  %v197_v32 = vadd.s32 (!%p134_p3), 8, %v895_v10  ;;  %v205_v33 = vadd.s32 (!%p134_p3), 72, %v895_v10 }
   0xc   : > { %187 = vst.msk [vmem:[#allocation2 + $0x48] sm:$0xff] (!%p134_p3), %vm177_vm0, %v837_v11  ;;  %188 = vst.msk [vmem:[#allocation2 + $0x50] sm:$0xff] (!%p134_p3), %vm177_vm0, %v837_v11  ;;  %vm234_vm1 = vcmp.eq.s32.totalorder (!%p134_p3), %v213_v12, %v919_v15  ;;  %v221_v18 = vadd.s32 (!%p134_p3), %v887_v6, %v204_v13  ;;  %v759_v26 = vpack.c.bf16 (!%p134_p3), %v309_v25, %v308_v24  ;;  %v311_v28 = vld [vmem:[%s1079_s1 + $0x68] sm:$0xff] (!%p134_p3)  ;;  %v312_v30 = vld [vmem:[%s1079_s1 + $0x70] sm:$0xff] (!%p134_p3)  ;;  %v198_v34 = vadd.s32 (!%p134_p3), 16, %v895_v10 }
   0xd   : > { %189 = vst.msk [vmem:[#allocation2 + $0x58] sm:$0xff] (!%p134_p3), %vm177_vm0, %v837_v11  ;;  %190 = vst.msk [vmem:[#allocation2 + $0x60] sm:$0xff] (!%p134_p3), %vm177_vm0, %v837_v11  ;;  %715 = vmatprep.mubr.msk.f32.mxu0 (!%p134_p3), %vm234_vm1, %v838_v19  ;;  %v763_v29 = vpack.c.bf16 (!%p134_p3), %v311_v28, %v310_v27  ;;  %v313_v31 = vld [vmem:[%s1079_s1 + $0x78] sm:$0xff] (!%p134_p3)  ;;  %v206_v35 = vadd.s32 (!%p134_p3), 80, %v895_v10  ;;  %v214_v37 = vadd.s32 (!%p134_p3), %v887_v6, %v197_v32  ;;  %v199_v39 = vadd.s32 (!%p134_p3), 24, %v895_v10 }
   0xe   : > { %191 = vst.msk [vmem:[#allocation2 + $0x68] sm:$0xff] %vm177_vm0, %v837_v11  ;;  %192 = vst.msk [vmem:[#allocation2 + $0x70] sm:$0xff] %vm177_vm0, %v837_v11  ;;  %746 = vmatpush3.bf16.msra.mxu0 %v743_v7  ;;  %780 = vmatpush3.bf16.msra.mxu1 %v743_v7  ;;  %vm242_vm2 = vcmp.eq.s32.totalorder %v221_v18, %v919_v15  ;;  %v767_v36 = vpack.c.bf16 %v313_v31, %v312_v30  ;;  %v207_v42 = vadd.s32 88, %v895_v10  ;;  %v283_v61 = vld [vmem:[#allocation2 + $0x8] sm:$0xff]  ;;  %s1086_s24 = smov (!%p168_p4, %s613_s24), 63 }
   0xf   : > { %193 = vst.msk [vmem:[#allocation2 + $0x78] sm:$0xff] %vm177_vm0, %v837_v11  ;;  %748 = vmatprep.subr.bf16.mxu0 %v747_v14  ;;  %773 = vmatprep.subr.bf16.mxu1 %v747_v14  ;;  %v222_v38 = vadd.s32 %v887_v6, %v205_v33  ;;  %v215_v40 = vadd.s32 %v887_v6, %v198_v34  ;;  %v200_v43 = vadd.s32 32, %v895_v10  ;;  %v208_v44 = vadd.s32 96, %v895_v10  ;;  %v282_v63 = vld [vmem:[#allocation2] sm:$0xff]  ;;  %v284_v11 = vld [vmem:[#allocation2 + $0x10] sm:$0xff]  ;;  %s614_s9 = sshll.u32 %s1086_s24, 3 }
  0x10   : > { %727 = vmatprep.mubr.msk.f32.mxu1 %vm242_vm2, %v838_v19  ;;  %v223_v41 = vadd.s32 %v887_v6, %v206_v35  ;;  %vm235_vm3 = vcmp.eq.s32.totalorder %v214_v37, %v919_v15  ;;  %v216_v45 = vadd.s32 %v887_v6, %v199_v39  ;;  %v201_v46 = vadd.s32 40, %v895_v10  ;;  %v285_v9 = vld [vmem:[#allocation2 + $0x18] sm:$0xff]  ;;  %s1025_s27 = scalar_lea.vmem %s1080_s2, %s614_s9 }
  0x11   : > { %vm243_vm4 = vcmp.eq.s32.totalorder %v222_v38, %v919_v15  ;;  %vm236_vm5 = vcmp.eq.s32.totalorder %v215_v40, %v919_v15  ;;  %v224_v47 = vadd.s32 %v887_v6, %v207_v42  ;;  %v209_v48 = vadd.s32 104, %v895_v10  ;;  %v287_v21 = vld [vmem:[#allocation2 + $0x28] sm:$0xff]  ;;  %v288_v37 = vld [vmem:[#allocation2 + $0x30] sm:$0xff] }
  0x12   : > { %750 = vmatpush3.bf16.msra.mxu0 %v747_v14  ;;  %781 = vmatpush3.bf16.msra.mxu1 %v747_v14  ;;  %vm244_vm6 = vcmp.eq.s32.totalorder %v223_v41, %v919_v15  ;;  %v217_v49 = vadd.s32 %v887_v6, %v200_v43  ;;  %v225_v50 = vadd.s32 %v887_v6, %v208_v44  ;;  %v202_v51 = vadd.s32 48, %v895_v10  ;;  %v290_v0 = vld [vmem:[#allocation2 + $0x40] sm:$0xff]  ;;  %v289_v31 = vld [vmem:[#allocation2 + $0x38] sm:$0xff] }
  0x13   : > { %752 = vmatprep.subr.bf16.mxu0 %v751_v20  ;;  %774 = vmatprep.subr.bf16.mxu1 %v751_v20  ;;  %v210_v52 = vadd.s32 112, %v895_v10  ;;  %vm237_vm7 = vcmp.eq.s32.totalorder %v216_v45, %v919_v15  ;;  %v218_v53 = vadd.s32 %v887_v6, %v201_v46  ;;  %vm245_vm8 = vcmp.eq.s32.totalorder %v224_v47, %v919_v15  ;;  %v291_v62 = vld [vmem:[#allocation2 + $0x48] sm:$0xff]  ;;  %v292_v12 = vld [vmem:[#allocation2 + $0x50] sm:$0xff] }
  0x14   : > { %v226_v54 = vadd.s32 %v887_v6, %v209_v48  ;;  %v203_v55 = vadd.s32 56, %v895_v10  ;;  %v211_v56 = vadd.s32 120, %v895_v10  ;;  %vm238_vm9 = vcmp.eq.s32.totalorder %v217_v49, %v919_v15  ;;  %v293_v10 = vld [vmem:[#allocation2 + $0x58] sm:$0xff]  ;;  %v294_v24 = vld [vmem:[#allocation2 + $0x60] sm:$0xff] }
  0x15   : > { %vm246_vm10 = vcmp.eq.s32.totalorder %v225_v50, %v919_v15  ;;  %v219_v57 = vadd.s32 %v887_v6, %v202_v51  ;;  %v227_v58 = vadd.s32 %v887_v6, %v210_v52  ;;  %vm239_vm11 = vcmp.eq.s32.totalorder %v218_v53, %v919_v15  ;;  %v295_v22 = vld [vmem:[#allocation2 + $0x68] sm:$0xff]  ;;  %v296_v40 = vld [vmem:[#allocation2 + $0x70] sm:$0xff] }
  0x16   : > { %754 = vmatpush3.bf16.msra.mxu0 %v751_v20  ;;  %782 = vmatpush3.bf16.msra.mxu1 %v751_v20  ;;  %vm247_vm12 = vcmp.eq.s32.totalorder %v226_v54, %v919_v15  ;;  %v220_v59 = vadd.s32 %v887_v6, %v203_v55  ;;  %v228_v60 = vadd.s32 %v887_v6, %v211_v56  ;;  %v297_v32 = vld [vmem:[#allocation2 + $0x78] sm:$0xff] }
  0x17   : > { %756 = vmatprep.subr.bf16.mxu0 %v755_v23  ;;  %775 = vmatprep.subr.bf16.mxu1 %v755_v23  ;;  %vm240_vm13 = vcmp.eq.s32.totalorder %v219_v57, %v919_v15  ;;  %vm248_vm14 = vcmp.eq.s32.totalorder %v227_v58, %v919_v15 }
  0x18   : > { %vm241_vm15 = vcmp.eq.s32.totalorder %v220_v59, %v919_v15  ;;  %vm249_vm1 = vcmp.eq.s32.totalorder %v228_v60, %v919_v15 }
  0x1a   : > { %758 = vmatpush3.bf16.msra.mxu0 %v755_v23  ;;  %783 = vmatpush3.bf16.msra.mxu1 %v755_v23  ;;  %v286_v23 = vld [vmem:[#allocation2 + $0x20] sm:$0xff] }
  0x1b   : > { %760 = vmatprep.subr.bf16.mxu0 %v759_v26  ;;  %776 = vmatprep.subr.bf16.mxu1 %v759_v26 }
  0x1e   : > { %762 = vmatpush3.bf16.msra.mxu0 %v759_v26  ;;  %784 = vmatpush3.bf16.msra.mxu1 %v759_v26 }
  0x1f   : > { %764 = vmatprep.subr.bf16.mxu0 %v763_v29  ;;  %777 = vmatprep.subr.bf16.mxu1 %v763_v29 }
  0x22   : > { %766 = vmatpush3.bf16.msra.mxu0 %v763_v29  ;;  %785 = vmatpush3.bf16.msra.mxu1 %v763_v29 }
  0x23   : > { %768 = vmatprep.subr.bf16.mxu0 %v767_v36  ;;  %778 = vmatprep.subr.bf16.mxu1 %v767_v36 }
  0x26   : > { %770 = vmatpush3.bf16.msra.mxu0 %v767_v36  ;;  %786 = vmatpush3.bf16.msra.mxu1 %v767_v36 }
  0x29   : > { %716 = vmatmul.mubr.msk.f32.vlgmr.msra.gmra.mrb[0].mxu0 %vm235_vm3, %v838_v19  ;;  %728 = vmatmul.mubr.msk.f32.vlgmr.msra.gmra.mrb[0].mxu1 %vm243_vm4, %v838_v19 }
  0x2a   : > { %718 = vmatprep.mubr.msk.f32.mxu0 %vm236_vm5, %v838_v19  ;;  %730 = vmatprep.mubr.msk.f32.mxu1 %vm244_vm6, %v838_v19 }
  0x2d   : > { %719 = vmatmul.mubr.msk.f32.gmra.mrb[2].mxu0 %vm237_vm7, %v838_v19  ;;  %731 = vmatmul.mubr.msk.f32.gmra.mrb[2].mxu1 %vm245_vm8, %v838_v19 }
  0x2e   : > { %721 = vmatprep.mubr.msk.f32.mxu0 %vm238_vm9, %v838_v19  ;;  %733 = vmatprep.mubr.msk.f32.mxu1 %vm246_vm10, %v838_v19 }
  0x31   : > { %722 = vmatmul.mubr.msk.f32.gmra.mrb[4].mxu0 %vm239_vm11, %v838_v19  ;;  %734 = vmatmul.mubr.msk.f32.gmra.mrb[4].mxu1 %vm247_vm12, %v838_v19 }
  0x32   : > { %724 = vmatprep.mubr.msk.f32.mxu0 %vm240_vm13, %v838_v19  ;;  %736 = vmatprep.mubr.msk.f32.mxu1 %vm248_vm14, %v838_v19 }
  0x35   : > { %725 = vmatmul.mubr.msk.f32.gmra.mrb[6].mxu0 %vm241_vm15, %v838_v19  ;;  %737 = vmatmul.mubr.msk.f32.gmra.mrb[6].mxu1 %vm249_vm1, %v838_v19 }
  0xfc   : > { %v717_v1 = vpop.f32.mrb[0].mxu0  ;;  %v729_v2 = vpop.f32.mrb[0].mxu1 }
  0xfd   : > { %v460_v3 = vadd.f32 %v717_v1, %v283_v61  ;;  %v468_v4 = vadd.f32 %v729_v2, %v291_v62  ;;  %v380_v5 = vpop.f32.mrb[1].mxu0  ;;  %v420_v6 = vpop.f32.mrb[1].mxu1 }
  0xfe   : > { %v459_v7 = vadd.f32 %v380_v5, %v282_v63  ;;  %v467_v8 = vadd.f32 %v420_v6, %v290_v0 }
  0xff   : > { %477 = vst.msk [vmem:[#allocation2 + $0x8] sm:$0xff] %vm177_vm0, %v460_v3  ;;  %485 = vst.msk [vmem:[#allocation2 + $0x48] sm:$0xff] %vm177_vm0, %v468_v4 }
 0x100   : > { %476 = vst.msk [vmem:[#allocation2] sm:$0xff] %vm177_vm0, %v459_v7  ;;  %484 = vst.msk [vmem:[#allocation2 + $0x40] sm:$0xff] %vm177_vm0, %v467_v8  ;;  %v720_v13 = vpop.f32.mrb[2].mxu0  ;;  %v732_v14 = vpop.f32.mrb[2].mxu1 }
 0x101   : > { %v462_v15 = vadd.f32 %v720_v13, %v285_v9  ;;  %v470_v16 = vadd.f32 %v732_v14, %v293_v10  ;;  %v390_v17 = vpop.f32.mrb[3].mxu0  ;;  %v430_v18 = vpop.f32.mrb[3].mxu1 }
 0x102   : > { %v461_v19 = vadd.f32 %v390_v17, %v284_v11  ;;  %v469_v20 = vadd.f32 %v430_v18, %v292_v12 }
 0x103   : > { %479 = vst.msk [vmem:[#allocation2 + $0x18] sm:$0xff] %vm177_vm0, %v462_v15  ;;  %487 = vst.msk [vmem:[#allocation2 + $0x58] sm:$0xff] %vm177_vm0, %v470_v16 }
 0x104   : > { %478 = vst.msk [vmem:[#allocation2 + $0x10] sm:$0xff] %vm177_vm0, %v461_v19  ;;  %486 = vst.msk [vmem:[#allocation2 + $0x50] sm:$0xff] %vm177_vm0, %v469_v20  ;;  %v723_v25 = vpop.f32.mrb[4].mxu0  ;;  %v735_v26 = vpop.f32.mrb[4].mxu1 }
 0x105   : > { %v464_v27 = vadd.f32 %v723_v25, %v287_v21  ;;  %v472_v28 = vadd.f32 %v735_v26, %v295_v22  ;;  %v400_v29 = vpop.f32.mrb[5].mxu0  ;;  %v440_v30 = vpop.f32.mrb[5].mxu1 }
 0x106   : > { %v496_v33 = vld [vmem:[#allocation2 + $0x8] sm:$0xff]  ;;  %v463_v35 = vadd.f32 %v400_v29, %v286_v23  ;;  %v471_v36 = vadd.f32 %v440_v30, %v294_v24 }
 0x107   : > { %v504_v34 = vld [vmem:[#allocation2 + $0x48] sm:$0xff]  ;;  %512 = vst.msk [vmem:[%s1025_s27 + $0x8] sm:$0xff] %vm177_vm0, %v496_v33  ;;  %v495_v38 = vld [vmem:[#allocation2] sm:$0xff]  ;;  %481 = vst.msk [vmem:[#allocation2 + $0x28] sm:$0xff] %vm177_vm0, %v464_v27 }
 0x108   : > { %520 = vst.msk [vmem:[%s1025_s27 + $0x48] sm:$0xff] %vm177_vm0, %v504_v34  ;;  %v503_v39 = vld [vmem:[#allocation2 + $0x40] sm:$0xff]  ;;  %489 = vst.msk [vmem:[#allocation2 + $0x68] sm:$0xff] %vm177_vm0, %v472_v28  ;;  %v726_v41 = vpop.f32.mrb[6].mxu0  ;;  %v738_v42 = vpop.f32.mrb[6].mxu1 }
 0x109   : > { %511 = vst.msk [vmem:[%s1025_s27] sm:$0xff] %vm177_vm0, %v495_v38  ;;  %519 = vst.msk [vmem:[%s1025_s27 + $0x40] sm:$0xff] %vm177_vm0, %v503_v39  ;;  %v466_v43 = vadd.f32 %v726_v41, %v289_v31  ;;  %v474_v44 = vadd.f32 %v738_v42, %v297_v32  ;;  %v410_v45 = vpop.f32.mrb[7].mxu0  ;;  %v450_v46 = vpop.f32.mrb[7].mxu1 }
 0x10a   : > { %480 = vst.msk [vmem:[#allocation2 + $0x20] sm:$0xff] %vm177_vm0, %v463_v35  ;;  %488 = vst.msk [vmem:[#allocation2 + $0x60] sm:$0xff] %vm177_vm0, %v471_v36  ;;  %v498_v47 = vld [vmem:[#allocation2 + $0x18] sm:$0xff]  ;;  %v465_v49 = vadd.f32 %v410_v45, %v288_v37  ;;  %v473_v50 = vadd.f32 %v450_v46, %v296_v40 }
 0x10b   : > { %v506_v48 = vld [vmem:[#allocation2 + $0x58] sm:$0xff]  ;;  %514 = vst.msk [vmem:[%s1025_s27 + $0x18] sm:$0xff] %vm177_vm0, %v498_v47  ;;  %v497_v51 = vld [vmem:[#allocation2 + $0x10] sm:$0xff]  ;;  %483 = vst.msk [vmem:[#allocation2 + $0x38] sm:$0xff] %vm177_vm0, %v466_v43 }
 0x10c   : > { %522 = vst.msk [vmem:[%s1025_s27 + $0x58] sm:$0xff] %vm177_vm0, %v506_v48  ;;  %v505_v52 = vld [vmem:[#allocation2 + $0x50] sm:$0xff]  ;;  %491 = vst.msk [vmem:[#allocation2 + $0x78] sm:$0xff] %vm177_vm0, %v474_v44 }
 0x10d   : > { %513 = vst.msk [vmem:[%s1025_s27 + $0x10] sm:$0xff] %vm177_vm0, %v497_v51  ;;  %521 = vst.msk [vmem:[%s1025_s27 + $0x50] sm:$0xff] %vm177_vm0, %v505_v52 }
 0x10e   : > { %482 = vst.msk [vmem:[#allocation2 + $0x30] sm:$0xff] %vm177_vm0, %v465_v49  ;;  %490 = vst.msk [vmem:[#allocation2 + $0x70] sm:$0xff] %vm177_vm0, %v473_v50  ;;  %v500_v53 = vld [vmem:[#allocation2 + $0x28] sm:$0xff] }
 0x10f   : > { %v508_v54 = vld [vmem:[#allocation2 + $0x68] sm:$0xff]  ;;  %516 = vst.msk [vmem:[%s1025_s27 + $0x28] sm:$0xff] %vm177_vm0, %v500_v53 }
 0x110   : > { %524 = vst.msk [vmem:[%s1025_s27 + $0x68] sm:$0xff] %vm177_vm0, %v508_v54 }
 0x111   : > { %v499_v55 = vld [vmem:[#allocation2 + $0x20] sm:$0xff] }
 0x112   : > { %v507_v56 = vld [vmem:[#allocation2 + $0x60] sm:$0xff]  ;;  %515 = vst.msk [vmem:[%s1025_s27 + $0x20] sm:$0xff] %vm177_vm0, %v499_v55  ;;  %v502_v57 = vld [vmem:[#allocation2 + $0x38] sm:$0xff] }
 0x113   : > { %523 = vst.msk [vmem:[%s1025_s27 + $0x60] sm:$0xff] %vm177_vm0, %v507_v56  ;;  %v510_v58 = vld [vmem:[#allocation2 + $0x78] sm:$0xff]  ;;  %518 = vst.msk [vmem:[%s1025_s27 + $0x38] sm:$0xff] %vm177_vm0, %v502_v57 }
 0x114   : > { %526 = vst.msk [vmem:[%s1025_s27 + $0x78] sm:$0xff] %vm177_vm0, %v510_v58 }
 0x115   : > { %v501_v59 = vld [vmem:[#allocation2 + $0x30] sm:$0xff] }
 0x116   : > { %v509_v60 = vld [vmem:[#allocation2 + $0x70] sm:$0xff]  ;;  %517 = vst.msk [vmem:[%s1025_s27 + $0x30] sm:$0xff] %vm177_vm0, %v501_v59 }
 0x117   : > { %525 = vst.msk [vmem:[%s1025_s27 + $0x70] sm:$0xff] %vm177_vm0, %v509_v60 }
 0x118 PF: > { %s12_s11 = sadd.s32 1, %s835_s11   ;;  %s1081_s9 = smov %s831_s10 }
 0x119   : > { %p9_p5 = scmp.ge.s32.totalorder %s12_s11, 6   ;;  %s1082_s10 = smov %s1084_s12 }
 0x11b   :  { %11 = sbr.rel (!%p9_p5) target bundleno = 2 (0x2), region = 69 }

</bundles_post_ra>
